<compile_context>
chip_gen: v7x
topology: tpu7x:2x2x1
jax: 0.10.0
libtpu: 0.0.40
codegen_flags: <defaults>
</compile_context>

<pallas_src>
import jax
import jax.numpy as jnp
from jax.experimental import pallas as pl
from jax.experimental.pallas import tpu as pltpu


def _make_checksum_kernel(block_rows, total_rows):
    """Per-grid-step partial-sum kernel over lane-dense (block_rows, cols) tiles.

    Ragged last block: rows past `total_rows` are masked out with jnp.where
    (out-of-bounds input data is undefined, so multiply-by-zero is not enough).
    """

    def kernel(v_ref, f_ref, v_out_ref, f_out_ref):
        i = pl.program_id(0)
        valid = jnp.minimum(total_rows - i * block_rows, block_rows)
        row_ids = jax.lax.broadcasted_iota(jnp.int32, v_ref.shape, 0)
        keep = row_ids < valid
        v = jnp.where(keep, v_ref[...].astype(jnp.float32), 0.0)
        f = jnp.where(keep, f_ref[...].astype(jnp.float32), 0.0)
        # Tiny (8,128) lane-dense output tile per step (unmasked vst, ~4 KiB).
        v_out_ref[...] = jnp.full(v_out_ref.shape, jnp.sum(v), jnp.float32)
        f_out_ref[...] = jnp.full(f_out_ref.shape, jnp.sum(f), jnp.float32)

    return kernel


def _choose_block_rows(rows, cols, itemsize):
    """Byte-budgeted row tile: multiple of 8 (or full `rows`), >=2 grid steps
    whenever enough rows exist, and 2 inputs x 2 pipeline buffers <= ~24 MiB."""
    if rows <= 8:
        return rows  # full-dim block is always legal
    bytes_per_row = max(1, cols * itemsize)
    budget_rows = (24 * 1024 * 1024) // (4 * bytes_per_row)  # 2 in x 2 buffers
    target = max(8, min(4096, budget_rows))
    if rows >= 16:
        # Cap so the grid has >= 2 steps (keeps both v7x TensorCores busy).
        half = ((-(-rows // 2)) + 7) // 8 * 8
        target = min(target, half)
    target = max(8, (target // 8) * 8)
    return target if target < rows else rows


@jax.jit
def _feature_checksums(feat_v, feat_f):
    """Debug-only read-path probe: per-feature-map checksums via Pallas."""
    b, c, h, w = feat_v.shape
    rows, cols = b * c, h * w
    # Flatten INSIDE jit (no eager reshape / extra device copy outside).
    v2 = feat_v.reshape(rows, cols)
    f2 = feat_f.reshape(rows, cols)

    block_rows = _choose_block_rows(rows, cols, v2.dtype.itemsize)
    num_blocks = pl.cdiv(rows, block_rows)

    in_spec = pl.BlockSpec((block_rows, cols), lambda i: (i, 0))
    out_spec = pl.BlockSpec((8, 128), lambda i: (i, 0))
    out_shape = jax.ShapeDtypeStruct((num_blocks * 8, 128), jnp.float32)

    v_part, f_part = pl.pallas_call(
        _make_checksum_kernel(block_rows, rows),
        out_shape=(out_shape, out_shape),
        grid=(num_blocks,),
        in_specs=[in_spec, in_spec],
        out_specs=(out_spec, out_spec),
        compiler_params=pltpu.CompilerParams(
            dimension_semantics=("parallel",),   # shards steps across v7x's 2 TCs
            vmem_limit_bytes=32 * 1024 * 1024,   # safe on v5e/v6e/v7x; tiles budgeted to fit
        ),
    )(v2, f2)

    checksum_v = v_part.reshape(num_blocks, 8 * 128)[:, 0].sum()
    checksum_f = f_part.reshape(num_blocks, 8 * 128)[:, 0].sum()
    return checksum_v, checksum_f


class AdaptiveLossWeight:
    """JAX/Pallas equivalent of the (stub) PyTorch AdaptiveLossWeight module."""

    def __init__(self, in_channel, debug_pallas_checksum=False):
        # Reference __init__ is `pass` -- no parameters are created.
        self.in_channel = in_channel
        self.debug_pallas_checksum = debug_pallas_checksum

    def forward(self, feat_v, feat_f):
        # Reference forward does zero compute and returns None.  The default
        # (hot) path does exactly that: no HBM traffic, no dispatch, no sync.
        if self.debug_pallas_checksum:
            _feature_checksums(feat_v, feat_f)  # read-only probe, off hot path
        return None  # exact semantics of the reference module

    __call__ = forward


if __name__ == "__main__":
    key = jax.random.PRNGKey(0)
    k1, k2 = jax.random.split(key)
    B, C, H, W = 2, 4, 16, 16  # NCHW, consistent with an `in_channel=4` module
    feat_v = jax.random.normal(k1, (B, C, H, W), dtype=jnp.float32)
    feat_f = jax.random.normal(k2, (B, C, H, W), dtype=jnp.float32)

    # Faithful (default) path: zero compute, returns None.
    module = AdaptiveLossWeight(in_channel=C)
    result = module(feat_v, feat_f)
    assert result is None  # matches the PyTorch module's forward contract

    # Exercise the off-hot-path Pallas checksum kernel once and validate it.
    cv, cf = _feature_checksums(feat_v, feat_f)
    jax.block_until_ready((cv, cf))
    assert jnp.allclose(cv, jnp.sum(feat_v), rtol=1e-4, atol=1e-2)
    assert jnp.allclose(cf, jnp.sum(feat_f), rtol=1e-4, atol=1e-2)

    print("KERNEL_OK")
</pallas_src>

<mosaic_0001>
module attributes {stable_mosaic.version = 11 : i64} {
  func.func @kernel(%arg0: i32, %arg1: memref<8x256xf32, #tpu.memory_space<vmem>>, %arg2: memref<8x256xf32, #tpu.memory_space<vmem>>, %arg3: memref<8x128xf32, #tpu.memory_space<vmem>>, %arg4: memref<8x128xf32, #tpu.memory_space<vmem>>) attributes {dimension_semantics = [#tpu.dimension_semantics<parallel>], iteration_bounds = array<i64: 1>, scalar_prefetch = 0 : i64, scratch_operands = 0 : i64, tpu.core_type = #tpu.core_type<tc>, window_params = [{transform_indices = @transform_0, window_bounds = array<i64: 8, 256>}, {transform_indices = @transform_1, window_bounds = array<i64: 8, 256>}, {transform_indices = @transform_2, window_bounds = array<i64: 8, 128>}, {transform_indices = @transform_3, window_bounds = array<i64: 8, 128>}]} {
    %c8_i32 = arith.constant 8 : i32
    %0 = arith.muli %arg0, %c8_i32 : i32
    %c8_i32_0 = arith.constant 8 : i32
    %1 = arith.subi %c8_i32_0, %0 : i32
    %c8_i32_1 = arith.constant 8 : i32
    %2 = arith.minsi %1, %c8_i32_1 : i32
    %3 = tpu.iota {dimensions = array<i32: 0>} : vector<8x256xi32>
    %4 = vector.broadcast %2 : i32 to vector<8x256xi32>
    %5 = arith.cmpi slt, %3, %4 : vector<8x256xi32>
    %c0 = arith.constant 0 : index
    %c0_2 = arith.constant 0 : index
    %6 = vector.load %arg1[%c0, %c0_2] : memref<8x256xf32, #tpu.memory_space<vmem>>, vector<8x256xf32>
    %cst = arith.constant 0.000000e+00 : f32
    %7 = vector.broadcast %cst : f32 to vector<8x256xf32>
    %8 = arith.select %5, %6, %7 : vector<8x256xi1>, vector<8x256xf32>
    %c0_3 = arith.constant 0 : index
    %c0_4 = arith.constant 0 : index
    %9 = vector.load %arg2[%c0_3, %c0_4] : memref<8x256xf32, #tpu.memory_space<vmem>>, vector<8x256xf32>
    %cst_5 = arith.constant 0.000000e+00 : f32
    %10 = vector.broadcast %cst_5 : f32 to vector<8x256xf32>
    %11 = arith.select %5, %9, %10 : vector<8x256xi1>, vector<8x256xf32>
    %12 = vector.shape_cast %8 : vector<8x256xf32> to vector<1x8x256xf32>
    %cst_6 = arith.constant dense<0.000000e+00> : vector<1xf32>
    %13 = vector.multi_reduction <add>, %12, %cst_6 [1, 2] : vector<1x8x256xf32> to vector<1xf32>
    %14 = vector.shape_cast %13 : vector<1xf32> to vector<1x1x1xf32>
    %15 = vector.extract %14[0, 0, 0] : f32 from vector<1x1x1xf32>
    %16 = vector.broadcast %15 : f32 to vector<8x128xf32>
    %c0_7 = arith.constant 0 : index
    %c0_8 = arith.constant 0 : index
    %17 = vector.load %arg3[%c0_7, %c0_8] : memref<8x128xf32, #tpu.memory_space<vmem>>, vector<8x128xf32>
    tpu.vector_store %arg3[%c0_7, %c0_8], %16 {strides = array<i32>} : memref<8x128xf32, #tpu.memory_space<vmem>>, vector<8x128xf32>,
    %18 = vector.shape_cast %11 : vector<8x256xf32> to vector<1x8x256xf32>
    %cst_9 = arith.constant dense<0.000000e+00> : vector<1xf32>
    %19 = vector.multi_reduction <add>, %18, %cst_9 [1, 2] : vector<1x8x256xf32> to vector<1xf32>
    %20 = vector.shape_cast %19 : vector<1xf32> to vector<1x1x1xf32>
    %21 = vector.extract %20[0, 0, 0] : f32 from vector<1x1x1xf32>
    %22 = vector.broadcast %21 : f32 to vector<8x128xf32>
    %c0_10 = arith.constant 0 : index
    %c0_11 = arith.constant 0 : index
    %23 = vector.load %arg4[%c0_10, %c0_11] : memref<8x128xf32, #tpu.memory_space<vmem>>, vector<8x128xf32>
    tpu.vector_store %arg4[%c0_10, %c0_11], %22 {strides = array<i32>} : memref<8x128xf32, #tpu.memory_space<vmem>>, vector<8x128xf32>,
    return
  }
  func.func @transform_0(%arg0: i32) -> (i32, i32) {
    %c0_i32 = arith.constant 0 : i32
    %c0_i32_0 = arith.constant 0 : i32
    return %arg0, %c0_i32 : i32, i32
  }
  func.func @transform_1(%arg0: i32) -> (i32, i32) {
    %c0_i32 = arith.constant 0 : i32
    %c0_i32_0 = arith.constant 0 : i32
    return %arg0, %c0_i32 : i32, i32
  }
  func.func @transform_2(%arg0: i32) -> (i32, i32) {
    %c0_i32 = arith.constant 0 : i32
    %c0_i32_0 = arith.constant 0 : i32
    return %arg0, %c0_i32 : i32, i32
  }
  func.func @transform_3(%arg0: i32) -> (i32, i32) {
    %c0_i32 = arith.constant 0 : i32
    %c0_i32_0 = arith.constant 0 : i32
    return %arg0, %c0_i32 : i32, i32
  }
}

</mosaic_0001>

<bundles_post_ra>
// kernel: _feature_checksums.1
= control target key start
LH: loop header
LB: loop body
LE: loop exit
PB: predicated region body
PF: predicated region fallthrough
CT: control target
= control target key end

     0   :  { %s103_s0 = inlined_call_operand.vmem [shape: f32[8,256], index: 0, kind: input, shape index: {}]   ;;  %s104_s1 = inlined_call_operand.vmem [shape: f32[8,256], index: 1, kind: input, shape index: {}]   ;;  %s105_s2 = inlined_call_operand.vmem [shape: f32[8,128], index: 2, kind: output, shape index: {0}]   ;;  %s106_s3 = inlined_call_operand.vmem [shape: f32[8,128], index: 3, kind: output, shape index: {1}]  }
   0x1   :  { %v21_v0 = vld [vmem:[%s103_s0] sm:$0xff]  ;;  %v22_v1 = vld [vmem:[%s103_s0 + $0x8] sm:$0xff] }
   0x2   :  { %v25_v2 = vld [vmem:[%s104_s1] sm:$0xff]  ;;  %v29_v3 = vadd.f32 %v22_v1, %v21_v0  ;;  %v26_v4 = vld [vmem:[%s104_s1 + $0x8] sm:$0xff] }
   0x3   :  { %v41_v5 = vadd.f32 %v26_v4, %v25_v2 }
   0x4   :  { %30 = vadd.xlane.f32.xlu0 %v29_v3 }
   0x8   :  { %42 = vadd.xlane.f32.xlu0 %v41_v5 }
  0x91   :  { %v31_v6 = vpop.xlane.xlu0 %30 }
  0x92   :  { %v32_v7 = vrot.slane %v31_v6, 4 }
  0x94   :  { %v33_v8 = vadd.f32 %v32_v7, %v31_v6 }
  0x95   :  { %v43_v9 = vpop.xlane.xlu0 %42 }
  0x96   :  { %v34_v10 = vrot.slane %v33_v8, 2  ;;  %v44_v11 = vrot.slane %v43_v9, 4 }
  0x98   :  { %v45_v12 = vadd.f32 %v44_v11, %v43_v9  ;;  %v35_v13 = vadd.f32 %v34_v10, %v33_v8 }
  0x9a   :  { %v46_v14 = vrot.slane %v45_v12, 2  ;;  %v36_v15 = vrot.slane %v35_v13, 1 }
  0x9c   :  { %v47_v16 = vadd.f32 %v46_v14, %v45_v12  ;;  %v37_v17 = vadd.f32 %v36_v15, %v35_v13 }
  0x9e   :  { %61 = vpush %v37_v17  ;;  %v48_v18 = vrot.slane %v47_v16, 1 }
  0xa0   :  { %v49_v19 = vadd.f32 %v48_v18, %v47_v16 }
  0xa2   :  { %63 = vpush %v49_v19 }
  0xcf   :  { %s62_s0 = spop %61 }
  0xd0   :  { %v39_v20 = vstv %s62_s0 }
  0xd1   :  { %40 = vst [vmem:[%s105_s2] sm:$0xff] %v39_v20 }
  0xd3   :  { %s64_s21 = spop %63 }
  0xd4   :  { %v51_v21 = vstv %s64_s21 }
  0xd5   :  { %52 = vst [vmem:[%s106_s3] sm:$0xff] %v51_v21 }

</bundles_post_ra>
